<compile_context>
chip_gen: v6e
topology: v6e:2x2x1
jax: 0.10.0
libtpu: 0.0.40
codegen_flags: <defaults>
</compile_context>

<pallas_src>
from functools import partial

import numpy as np
import jax
import jax.numpy as jnp
from jax.experimental import pallas as pl
from jax.experimental.pallas import tpu as pltpu


_VMEM_LIMIT = 32 * 1024 * 1024  # safe on v5e/v6e/v7x; tiles below use << this


def _cparams(dim_sem):
    return pltpu.CompilerParams(dimension_semantics=dim_sem,
                                vmem_limit_bytes=_VMEM_LIMIT)


def _ru(x, m):
    return (x + m - 1) // m * m


# ----------------------------------------------------------------------------
# Generic tiled matmul + bias (+ optional ReLU)
# ----------------------------------------------------------------------------
def _mm_kernel(x_ref, w_ref, b_ref, o_ref, acc_ref, *, relu):
    @pl.when(pl.program_id(2) == 0)
    def _init():
        acc_ref[...] = jnp.zeros_like(acc_ref)

    acc_ref[...] += jnp.dot(x_ref[...], w_ref[...],
                            preferred_element_type=jnp.float32)

    @pl.when(pl.program_id(2) == pl.num_programs(2) - 1)
    def _done():
        y = acc_ref[...] + b_ref[...]
        if relu:
            y = jnp.maximum(y, 0.0)
        o_ref[...] = y.astype(o_ref.dtype)


def matmul_bias(x, w, b, relu=False):
    """maybe_relu(x @ w + b) with M/N/K tiling, lane-dense (128-padded) N."""
    M, K = x.shape
    K2, N = w.shape
    assert K == K2
    TM, TN, TK = 512, 256, 512          # fits 64 MiB VMEM (v7x) with margin

    if M <= TM:
        Mp, tm = _ru(M, 8), _ru(M, 8)
    else:
        Mp, tm = _ru(M, TM), TM
    if N <= TN:
        Np, tn = _ru(N, 128), _ru(N, 128)
    else:
        Np, tn = _ru(N, TN), TN
    tk = TK if (K > TK and K % TK == 0) else K
    nk = K // tk

    xp = jnp.pad(x, ((0, Mp - M), (0, 0))) if Mp != M else x
    wp = jnp.pad(w, ((0, 0), (0, Np - N))) if Np != N else w
    bp = b.reshape(1, N)
    if Np != N:
        bp = jnp.pad(bp, ((0, 0), (0, Np - N)))

    out = pl.pallas_call(
        partial(_mm_kernel, relu=relu),
        grid=(Mp // tm, Np // tn, nk),
        in_specs=[
            pl.BlockSpec((tm, tk), lambda i, j, k: (i, k)),
            pl.BlockSpec((tk, tn), lambda i, j, k: (k, j)),
            pl.BlockSpec((1, tn), lambda i, j, k: (0, j)),
        ],
        out_specs=pl.BlockSpec((tm, tn), lambda i, j, k: (i, j)),
        out_shape=jax.ShapeDtypeStruct((Mp, Np), jnp.float32),
        scratch_shapes=[pltpu.VMEM((tm, tn), jnp.float32)],
        compiler_params=_cparams(("parallel", "parallel", "arbitrary")),
    )(xp, wp, bp)
    if Mp != M or Np != N:
        out = out[:M, :N]
    return out


# ----------------------------------------------------------------------------
# Fused depthwise 5x5 + pointwise 1x1 (bottleneck)
# ----------------------------------------------------------------------------
def _dwsep_kernel(x_ref, dww_ref, dwb_ref, pww_ref, pwb_ref, o_ref):
    Ho, Wo, Cout = o_ref.shape
    KH, KW, Cin = dww_ref.shape
    x = x_ref[...]                      # (Hp, Wp, Cin)
    w = dww_ref[...]                    # (KH, KW, Cin)
    acc = jnp.zeros((Ho, Wo, Cin), jnp.float32)
    for i in range(KH):
        for j in range(KW):
            acc = acc + x[i:i + Ho, j:j + Wo, :] * w[i:i + 1, j:j + 1, :]
    acc = jnp.maximum(acc + dwb_ref[...], 0.0)
    pw = pww_ref[...]
    pb = pwb_ref[...]                   # (1, Cout)
    # TODO(synk): per-row pointwise loop avoids in-kernel sublane reshapes;
    # tile rows for large spatial sizes.
    for h in range(Ho):
        y = jnp.dot(acc[h], pw, preferred_element_type=jnp.float32) + pb
        o_ref[h, :, :] = jnp.maximum(y, 0.0).astype(o_ref.dtype)


def dwsep_conv(x, dw_w, dw_b, pw_w, pw_b, padding):
    B, H, W, Cin = x.shape
    KH, KW, _ = dw_w.shape
    Cout = pw_w.shape[1]
    xp = jnp.pad(x, ((0, 0), (padding, padding), (padding, padding), (0, 0)))
    Hp, Wp = H + 2 * padding, W + 2 * padding
    Ho, Wo = Hp - KH + 1, Wp - KW + 1
    return pl.pallas_call(
        _dwsep_kernel,
        grid=(B,),
        in_specs=[
            pl.BlockSpec((None, Hp, Wp, Cin), lambda b: (b, 0, 0, 0)),
            pl.BlockSpec((KH, KW, Cin), lambda b: (0, 0, 0)),
            pl.BlockSpec((1, 1, Cin), lambda b: (0, 0, 0)),
            pl.BlockSpec((Cin, Cout), lambda b: (0, 0)),
            pl.BlockSpec((1, Cout), lambda b: (0, 0)),
        ],
        out_specs=pl.BlockSpec((None, Ho, Wo, Cout), lambda b: (b, 0, 0, 0)),
        out_shape=jax.ShapeDtypeStruct((B, Ho, Wo, Cout), jnp.float32),
        compiler_params=_cparams(("parallel",)),
    )(xp, dw_w, dw_b.reshape(1, 1, Cin), pw_w, pw_b.reshape(1, Cout))


# ----------------------------------------------------------------------------
# 3x3 conv (OCR feature conv) -- 9 shifted matmuls accumulated in-kernel
# ----------------------------------------------------------------------------
def _conv3x3_kernel(x_ref, w_ref, b_ref, o_ref):
    Ho, Wo, Cout = o_ref.shape
    x = x_ref[...]                      # (Ho+2, Wo+2, Cin)
    w = w_ref[...]                      # (9, Cin, Cout)
    b = b_ref[...]                      # (1, Cout)
    for h in range(Ho):
        acc = jnp.zeros((Wo, Cout), jnp.float32)
        for i in range(3):
            for j in range(3):
                acc = acc + jnp.dot(x[h + i, j:j + Wo, :], w[i * 3 + j],
                                    preferred_element_type=jnp.float32)
        o_ref[h, :, :] = jnp.maximum(acc + b, 0.0).astype(o_ref.dtype)


def conv3x3(x, w_flat, b, padding=1):
    B, H, W, Cin = x.shape
    Cout = w_flat.shape[1]
    w3 = w_flat.reshape(9, Cin, Cout)   # tap-major, same ordering as im2col
    xp = jnp.pad(x, ((0, 0), (padding, padding), (padding, padding), (0, 0)))
    Hp, Wp = H + 2 * padding, W + 2 * padding
    Ho, Wo = Hp - 2, Wp - 2
    return pl.pallas_call(
        _conv3x3_kernel,
        grid=(B,),
        in_specs=[
            pl.BlockSpec((None, Hp, Wp, Cin), lambda b_: (b_, 0, 0, 0)),
            pl.BlockSpec((9, Cin, Cout), lambda b_: (0, 0, 0)),
            pl.BlockSpec((1, Cout), lambda b_: (0, 0)),
        ],
        out_specs=pl.BlockSpec((None, Ho, Wo, Cout), lambda b_: (b_, 0, 0, 0)),
        out_shape=jax.ShapeDtypeStruct((B, Ho, Wo, Cout), jnp.float32),
        compiler_params=_cparams(("parallel",)),
    )(xp, w3, b.reshape(1, Cout))


# ----------------------------------------------------------------------------
# OCR SpatialGather: softmax(probs over spatial) @ feats
# ----------------------------------------------------------------------------
def _spatial_gather_kernel(p_ref, f_ref, o_ref, *, scale):
    p = p_ref[...] * scale
    p = p - p.max(axis=-1, keepdims=True)
    e = jnp.exp(p)
    p = e * pl.reciprocal(e.sum(axis=-1, keepdims=True), approx=True)
    o_ref[...] = jnp.dot(p, f_ref[...],
                         preferred_element_type=jnp.float32).astype(o_ref.dtype)


def spatial_gather(probs_bkn, feats_bnc, scale=1.0):
    B, K, N = probs_bkn.shape
    _, _, C = feats_bnc.shape
    return pl.pallas_call(
        partial(_spatial_gather_kernel, scale=scale),
        grid=(B,),
        in_specs=[
            pl.BlockSpec((None, K, N), lambda b: (b, 0, 0)),
            pl.BlockSpec((None, N, C), lambda b: (b, 0, 0)),
        ],
        out_specs=pl.BlockSpec((None, K, C), lambda b: (b, 0, 0)),
        out_shape=jax.ShapeDtypeStruct((B, K, C), jnp.float32),
        compiler_params=_cparams(("parallel",)),
    )(probs_bkn, feats_bnc)


# ----------------------------------------------------------------------------
# Fused OCR object-attention block:
#   q = fp2(relu(fp1(pooled))), k = fo2(relu(fo1(ctx))), v = fd(ctx)
#   attn = softmax(q k^T * scale) v ; out = relu(fu(attn))
# ----------------------------------------------------------------------------
def _ocr_attention_kernel(pool_ref, ctx_ref,
                          fp1w, fp1b, fp2w, fp2b,
                          fo1w, fo1b, fo2w, fo2b,
                          fdw, fdb, fuw, fub,
                          o_ref, *, scale):
    pool = pool_ref[...]                # (Nq, C)
    ctx = ctx_ref[...]                  # (K, C)
    q = jnp.maximum(jnp.dot(pool, fp1w[...],
                            preferred_element_type=jnp.float32) + fp1b[...], 0.0)
    q = jnp.maximum(jnp.dot(q, fp2w[...],
                            preferred_element_type=jnp.float32) + fp2b[...], 0.0)
    k = jnp.maximum(jnp.dot(ctx, fo1w[...],
                            preferred_element_type=jnp.float32) + fo1b[...], 0.0)
    k = jnp.maximum(jnp.dot(k, fo2w[...],
                            preferred_element_type=jnp.float32) + fo2b[...], 0.0)
    v = jnp.maximum(jnp.dot(ctx, fdw[...],
                            preferred_element_type=jnp.float32) + fdb[...], 0.0)
    sim = jax.lax.dot_general(q, k, (((1,), (1,)), ((), ())),
                              preferred_element_type=jnp.float32) * scale
    sim = sim - sim.max(axis=-1, keepdims=True)
    e = jnp.exp(sim)
    p = e * pl.reciprocal(e.sum(axis=-1, keepdims=True), approx=True)
    attn = jnp.dot(p, v, preferred_element_type=jnp.float32)      # (Nq, ck)
    out = jnp.maximum(jnp.dot(attn, fuw[...],
                              preferred_element_type=jnp.float32) + fub[...], 0.0)
    o_ref[...] = out.astype(o_ref.dtype)


def ocr_attention(pooled, context, params):
    B, Nq, C = pooled.shape
    _, K, _ = context.shape
    ck = params['fp1_w'].shape[1]
    dc = params['fu_w'].shape[1]
    scale = float(ck) ** -0.5

    names = ['fp1_w', 'fp1_b', 'fp2_w', 'fp2_b', 'fo1_w', 'fo1_b',
             'fo2_w', 'fo2_b', 'fd_w', 'fd_b', 'fu_w', 'fu_b']
    weights, wspecs = [], []
    for n in names:
        w = params[n]
        if w.ndim == 1:
            w = w.reshape(1, -1)
        weights.append(w)
        wspecs.append(pl.BlockSpec(w.shape, lambda b: (0, 0)))

    return pl.pallas_call(
        partial(_ocr_attention_kernel, scale=scale),
        grid=(B,),
        in_specs=[pl.BlockSpec((None, Nq, C), lambda b: (b, 0, 0)),
                  pl.BlockSpec((None, K, C), lambda b: (b, 0, 0))] + wspecs,
        out_specs=pl.BlockSpec((None, Nq, dc), lambda b: (b, 0, 0)),
        out_shape=jax.ShapeDtypeStruct((B, Nq, dc), jnp.float32),
        compiler_params=_cparams(("parallel",)),
    )(pooled, context, *weights)


# ----------------------------------------------------------------------------
# Fused OCR output bottleneck (concat-free) + semantic head
#   ocr = relu(attn @ Wa + feats @ Wf + b1) ; sem = ocr @ Ws + bs
# ----------------------------------------------------------------------------
def _bottleneck_sem_kernel(a_ref, f_ref, wa_ref, wf_ref, b1_ref, ws_ref, bs_ref,
                           o_ref):
    x = jnp.dot(a_ref[...], wa_ref[...], preferred_element_type=jnp.float32)
    x = x + jnp.dot(f_ref[...], wf_ref[...], preferred_element_type=jnp.float32)
    x = jnp.maximum(x + b1_ref[...], 0.0)
    y = jnp.dot(x, ws_ref[...], preferred_element_type=jnp.float32) + bs_ref[...]
    o_ref[...] = y.astype(o_ref.dtype)


def fused_bottleneck_sem(attn_rows, feat_rows, wa, wf, b1, ws, bs):
    M, dc = attn_rows.shape
    nc = ws.shape[1]
    TM = 512
    if M <= TM:
        Mp, tm = _ru(M, 8), _ru(M, 8)
    else:
        Mp, tm = _ru(M, TM), TM
    if Mp != M:
        attn_rows = jnp.pad(attn_rows, ((0, Mp - M), (0, 0)))
        feat_rows = jnp.pad(feat_rows, ((0, Mp - M), (0, 0)))
    out = pl.pallas_call(
        _bottleneck_sem_kernel,
        grid=(Mp // tm,),
        in_specs=[
            pl.BlockSpec((tm, dc), lambda i: (i, 0)),
            pl.BlockSpec((tm, dc), lambda i: (i, 0)),
            pl.BlockSpec((dc, dc), lambda i: (0, 0)),
            pl.BlockSpec((dc, dc), lambda i: (0, 0)),
            pl.BlockSpec((1, dc), lambda i: (0, 0)),
            pl.BlockSpec((dc, nc), lambda i: (0, 0)),
            pl.BlockSpec((1, nc), lambda i: (0, 0)),
        ],
        out_specs=pl.BlockSpec((tm, nc), lambda i: (i, 0)),
        out_shape=jax.ShapeDtypeStruct((Mp, nc), jnp.float32),
        compiler_params=_cparams(("parallel",)),
    )(attn_rows, feat_rows, wa, wf, b1.reshape(1, dc), ws, bs.reshape(1, nc))
    return out[:M] if Mp != M else out


# ----------------------------------------------------------------------------
# Separable bilinear interpolation (align_corners=True)
# ----------------------------------------------------------------------------
def _bilinear_matrix(out_size, in_size):
    A = np.zeros((out_size, in_size), dtype=np.float32)
    if out_size == 1:
        A[0, 0] = 1.0
        return A
    for o in range(out_size):
        s = o * (in_size - 1) / (out_size - 1)
        i0 = min(int(np.floor(s)), in_size - 1)
        i1 = min(i0 + 1, in_size - 1)
        f = s - i0
        A[o, i0] += 1.0 - f
        A[o, i1] += f
    return A


def resize_bilinear(x, out_hw):
    """Separable align_corners=True bilinear: A_h pass then A_w pass."""
    B, H, W, C = x.shape
    Ho, Wo = out_hw
    if (H, W) == (Ho, Wo):
        return x
    Ah = jnp.asarray(_bilinear_matrix(Ho, H))
    Aw = jnp.asarray(_bilinear_matrix(Wo, W))
    # H pass: (Ho, H) @ (H, B*W*C)
    t = jnp.transpose(x, (1, 0, 2, 3)).reshape(H, B * W * C)
    t = matmul_bias(Ah, t, jnp.zeros((B * W * C,), jnp.float32), relu=False)
    t = t.reshape(Ho, B, W, C)
    # W pass: (Wo, W) @ (W, B*Ho*C)
    t = jnp.transpose(t, (2, 1, 0, 3)).reshape(W, B * Ho * C)
    t = matmul_bias(Aw, t, jnp.zeros((B * Ho * C,), jnp.float32), relu=False)
    t = t.reshape(Wo, B, Ho, C)
    return jnp.transpose(t, (1, 2, 0, 3))


# ----------------------------------------------------------------------------
# Parameter init (deterministic, synthetic)
# ----------------------------------------------------------------------------
def init_params(key, cfg):
    dc = cfg['decoder_channels']
    nc = cfg['num_classes']
    cin = cfg['in_channels'] + sum(cfg['low_level_channels'])
    ck = dc // 2
    shapes = {
        'dw_w': (5, 5, cin), 'dw_b': (cin,),          # bottleneck depthwise 5x5
        'pw_w': (cin, dc),   'pw_b': (dc,),           # bottleneck pointwise
        'aux_w': (dc, nc),   'aux_b': (nc,),          # aux_semantic head (1x1)
        'ocr3_w': (9 * dc, dc), 'ocr3_b': (dc,),      # OCR conv3x3 (tap-major)
        'fp1_w': (dc, ck), 'fp1_b': (ck,),            # f_pixel (query) 1
        'fp2_w': (ck, ck), 'fp2_b': (ck,),            # f_pixel (query) 2
        'fo1_w': (dc, ck), 'fo1_b': (ck,),            # f_object (key) 1
        'fo2_w': (ck, ck), 'fo2_b': (ck,),            # f_object (key) 2
        'fd_w': (dc, ck),  'fd_b': (ck,),             # f_down (value)
        'fu_w': (ck, dc),  'fu_b': (dc,),             # f_up
        'bottle_w': (2 * dc, dc), 'bottle_b': (dc,),  # OCR output bottleneck
        'sem_w': (dc, nc), 'sem_b': (nc,),            # semantic head (1x1)
    }
    params = {}
    keys = jax.random.split(key, len(shapes))
    for k_, (name, shp) in zip(keys, sorted(shapes.items())):
        params[name] = 0.1 * jax.random.normal(k_, shp, jnp.float32)
    return params


# ----------------------------------------------------------------------------
# Forward pass
# ----------------------------------------------------------------------------
def panoptic_ocr_forward(features, params, cfg):
    # features: dict of NCHW arrays (PyTorch convention)
    lows = [jnp.transpose(features[k], (0, 2, 3, 1)) for k in cfg['low_level_key']]
    high = jnp.transpose(features[cfg['feature_key']], (0, 2, 3, 1))
    target_hw = lows[-1].shape[1:3]

    all_feats = [resize_bilinear(x, target_hw) for x in lows]
    all_feats.append(resize_bilinear(high, target_hw))
    fuse = jnp.concatenate(all_feats, axis=-1)

    # bottleneck: fused depthwise-separable conv (kernel 5, padding 1)
    sem = dwsep_conv(fuse, params['dw_w'], params['dw_b'],
                     params['pw_w'], params['pw_b'], padding=1)
    B, H, W, dc = sem.shape
    N = H * W
    sem_rows = sem.reshape(B * N, dc)

    pred = {}
    nc = params['aux_w'].shape[1]
    aux_rows = matmul_bias(sem_rows, params['aux_w'], params['aux_b'], relu=False)
    aux = aux_rows.reshape(B, H, W, nc)
    pred['aux_semantic'] = jnp.transpose(aux, (0, 3, 1, 2))

    # ---- OCR head ----
    feats = conv3x3(sem, params['ocr3_w'], params['ocr3_b'], padding=1)
    probs_bkn = jnp.transpose(aux.reshape(B, N, nc), (0, 2, 1))
    feats_bnc = feats.reshape(B, N, dc)
    context = spatial_gather(probs_bkn, feats_bnc, scale=1.0)     # (B, K, dc)

    # object-attention block (pool scale = 2), fully fused
    Hp2, Wp2 = H // 2, W // 2
    pooled = feats.reshape(B, Hp2, 2, Wp2, 2, dc).max(axis=(2, 4))
    pooled = pooled.reshape(B, Hp2 * Wp2, dc)
    attn = ocr_attention(pooled, context, params)                 # (B, Hp2*Wp2, dc)
    attn = attn.reshape(B, Hp2, Wp2, dc)
    attn = resize_bilinear(attn, (H, W))

    # OCR output bottleneck (concat-free) + semantic head, fused
    sem_out = fused_bottleneck_sem(
        attn.reshape(B * N, dc), feats.reshape(B * N, dc),
        params['bottle_w'][:dc], params['bottle_w'][dc:], params['bottle_b'],
        params['sem_w'], params['sem_b'])
    semantic = sem_out.reshape(B, H, W, nc)
    pred['semantic'] = jnp.transpose(semantic, (0, 3, 1, 2))
    return pred


# ----------------------------------------------------------------------------
if __name__ == "__main__":
    cfg = dict(
        in_channels=16,
        feature_key='res5',
        low_level_channels=[4, 8],
        low_level_key=['res2', 'res3'],
        low_level_channels_project=[32, 16],
        decoder_channels=32,
        atrous_rates=(6, 12, 18),
        num_classes=5,
    )

    key = jax.random.PRNGKey(0)
    k2, k3, k5 = jax.random.split(key, 3)
    features = {
        'res2': jax.random.normal(k2, (2, 4, 16, 16), jnp.float32),
        'res3': jax.random.normal(k3, (2, 8, 8, 8), jnp.float32),
        'res5': jax.random.normal(k5, (2, 16, 4, 4), jnp.float32),
    }

    params = init_params(jax.random.PRNGKey(42), cfg)

    pred = panoptic_ocr_forward(features, params, cfg)
    pred = {k: jax.block_until_ready(v) for k, v in pred.items()}

    # target spatial = res3 (8,8); bottleneck 5x5 pad=1 -> 6x6
    assert pred['aux_semantic'].shape == (2, 5, 6, 6), pred['aux_semantic'].shape
    assert pred['semantic'].shape == (2, 5, 6, 6), pred['semantic'].shape
    assert all(jnp.isfinite(v).all() for v in pred.values())
    print("KERNEL_OK")
</pallas_src>

<mosaic_0001>
module attributes {stable_mosaic.version = 11 : i64} {
  func.func @_mm_kernel(%arg0: i32, %arg1: i32, %arg2: i32, %arg3: memref<8x16xf32, #tpu.memory_space<vmem>>, %arg4: memref<16x128xf32, #tpu.memory_space<vmem>>, %arg5: memref<1x128xf32, #tpu.memory_space<vmem>>, %arg6: memref<8x128xf32, #tpu.memory_space<vmem>>, %arg7: memref<8x128xf32, #tpu.memory_space<vmem>>) attributes {dimension_semantics = [#tpu.dimension_semantics<parallel>, #tpu.dimension_semantics<parallel>, #tpu.dimension_semantics<arbitrary>], iteration_bounds = array<i64: 1, 1, 1>, scalar_prefetch = 0 : i64, scratch_operands = 1 : i64, tpu.core_type = #tpu.core_type<tc>, window_params = [{transform_indices = @transform_0, window_bounds = array<i64: 8, 16>}, {transform_indices = @transform_1, window_bounds = array<i64: 16, 128>}, {transform_indices = @transform_2, window_bounds = array<i64: 1, 128>}, {transform_indices = @transform_3, window_bounds = array<i64: 8, 128>}]} {
    %c0_i32 = arith.constant 0 : i32
    %0 = arith.cmpi eq, %arg2, %c0_i32 : i32
    %1 = arith.extui %0 : i1 to i32
    %c0_i32_0 = arith.constant 0 : i32
    %2 = arith.cmpi ne, %1, %c0_i32_0 : i32
    scf.if %2 {
      %cst_10 = arith.constant 0.000000e+00 : f32
      %12 = vector.broadcast %cst_10 : f32 to vector<8x128xf32>
      %c0_11 = arith.constant 0 : index
      %c0_12 = arith.constant 0 : index
      %13 = vector.load %arg7[%c0_11, %c0_12] : memref<8x128xf32, #tpu.memory_space<vmem>>, vector<8x128xf32>
      tpu.vector_store %arg7[%c0_11, %c0_12], %12 {strides = array<i32>} : memref<8x128xf32, #tpu.memory_space<vmem>>, vector<8x128xf32>,
    } else {
    }
    %c0 = arith.constant 0 : index
    %c0_1 = arith.constant 0 : index
    %3 = vector.load %arg7[%c0, %c0_1] : memref<8x128xf32, #tpu.memory_space<vmem>>, vector<8x128xf32>
    %c0_2 = arith.constant 0 : index
    %c0_3 = arith.constant 0 : index
    %4 = vector.load %arg3[%c0_2, %c0_3] : memref<8x16xf32, #tpu.memory_space<vmem>>, vector<8x16xf32>
    %c0_4 = arith.constant 0 : index
    %c0_5 = arith.constant 0 : index
    %5 = vector.load %arg4[%c0_4, %c0_5] : memref<16x128xf32, #tpu.memory_space<vmem>>, vector<16x128xf32>
    %cst = arith.constant dense<0.000000e+00> : vector<8x128xf32>
    %6 = tpu.matmul %4, %5, %cst {dimension_numbers = #tpu.dot_dimension_numbers<[1], [0], [0], [1], [0, 0, 1, 1], [], []>} : vector<8x16xf32>, vector<16x128xf32>, vector<8x128xf32> -> vector<8x128xf32>
    %7 = arith.addf %3, %6 : vector<8x128xf32>
    %c0_6 = arith.constant 0 : index
    %c0_7 = arith.constant 0 : index
    %8 = vector.load %arg7[%c0_6, %c0_7] : memref<8x128xf32, #tpu.memory_space<vmem>>, vector<8x128xf32>
    tpu.vector_store %arg7[%c0_6, %c0_7], %7 {strides = array<i32>} : memref<8x128xf32, #tpu.memory_space<vmem>>, vector<8x128xf32>,
    %c0_i32_8 = arith.constant 0 : i32
    %9 = arith.cmpi eq, %arg2, %c0_i32_8 : i32
    %10 = arith.extui %9 : i1 to i32
    %c0_i32_9 = arith.constant 0 : i32
    %11 = arith.cmpi ne, %10, %c0_i32_9 : i32
    scf.if %11 {
      %c0_10 = arith.constant 0 : index
      %c0_11 = arith.constant 0 : index
      %12 = vector.load %arg7[%c0_10, %c0_11] : memref<8x128xf32, #tpu.memory_space<vmem>>, vector<8x128xf32>
      %c0_12 = arith.constant 0 : index
      %c0_13 = arith.constant 0 : index
      %13 = vector.load %arg5[%c0_12, %c0_13] : memref<1x128xf32, #tpu.memory_space<vmem>>, vector<1x128xf32>
      %14 = vector.broadcast %13 : vector<1x128xf32> to vector<8x128xf32>
      %15 = arith.addf %12, %14 : vector<8x128xf32>
      %c0_14 = arith.constant 0 : index
      %c0_15 = arith.constant 0 : index
      %16 = vector.load %arg6[%c0_14, %c0_15] : memref<8x128xf32, #tpu.memory_space<vmem>>, vector<8x128xf32>
      tpu.vector_store %arg6[%c0_14, %c0_15], %15 {strides = array<i32>} : memref<8x128xf32, #tpu.memory_space<vmem>>, vector<8x128xf32>,
    } else {
    }
    return
  }
  func.func @transform_0(%arg0: i32, %arg1: i32, %arg2: i32) -> (i32, i32) {
    %c0_i32 = arith.constant 0 : i32
    return %arg0, %arg2 : i32, i32
  }
  func.func @transform_1(%arg0: i32, %arg1: i32, %arg2: i32) -> (i32, i32) {
    %c0_i32 = arith.constant 0 : i32
    return %arg2, %arg1 : i32, i32
  }
  func.func @transform_2(%arg0: i32, %arg1: i32, %arg2: i32) -> (i32, i32) {
    %c0_i32 = arith.constant 0 : i32
    %c0_i32_0 = arith.constant 0 : i32
    return %c0_i32, %arg1 : i32, i32
  }
  func.func @transform_3(%arg0: i32, %arg1: i32, %arg2: i32) -> (i32, i32) {
    %c0_i32 = arith.constant 0 : i32
    return %arg0, %arg1 : i32, i32
  }
}

</mosaic_0001>

<bundles_post_ra>
// kernel: tpu_custom_call.1
= control target key start
LH: loop header
LB: loop body
LE: loop exit
PB: predicated region body
PF: predicated region fallthrough
CT: control target
= control target key end

     0   :  { %8 = vsyncpa [#allocation4], 0  ;;  %s279_s0 = inlined_call_operand.hbm [shape: f32[8,16], index: 0, kind: input, shape index: {}]   ;;  %s280_s1 = inlined_call_operand.hbm [shape: f32[16,128], index: 1, kind: input, shape index: {}]   ;;  %s281_s2 = inlined_call_operand.vmem [shape: f32[1,128], index: 2, kind: input, shape index: {}]   ;;  %s282_s3 = inlined_call_operand.hbm [shape: f32[8,128], index: 3, kind: output, shape index: {}]  }
   0x1   :  { %9 = vsyncpa [#allocation7], 0 }
   0x2   :  { %10 = vsyncpa [#allocation5], 0  ;;  %s240_s12 = smov [#allocation3]   ;;  %s241_s14 = smov [#allocation6]  }
   0x3   :  { %s17_s13 = sshll.u32 %s240_s12, 4  ;;  %s26_s15 = sshll.u32 %s241_s14, 4  ;;  %s18_s13 = int_to_ptr.vmem [resolvable:$true] %s17_s13  ;;  %s27_s15 = int_to_ptr.vmem [resolvable:$true] %s26_s15 }
   0x4   :  { %s182_s16 = scalar_lea.vmem %s18_s13, 128  ;;  %p187_p1 = scmp.lt.s32.totalorder %s18_s13, %s18_s13 }
   0x5   :  { %p183_p0 = scmp.ne.s32.totalorder %s18_s13, %s182_s16  ;;  %p188_p2 = scmp.lt.s32.totalorder %s182_s16, %s182_s16 }
   0x7   :  { %p189_p3 = por %p188_p2, %p187_p1 }
   0x9   :  { %p190_p4 = pnand %p189_p3, %p183_p0 }
   0xb   :  { %193 = shalt.err (!%p190_p4)
}
   0xc   :  { %20 = dma.hbm_to_vmem [thread:$0]  %s279_s0, 128, %s18_s13, [#allocation4]  }
   0xd   :  { %s202_s19 = scalar_lea.vmem %s27_s15, 256  ;;  %p207_p6 = scmp.lt.s32.totalorder %s27_s15, %s27_s15 }
   0xe   :  { %p203_p5 = scmp.ne.s32.totalorder %s27_s15, %s202_s19  ;;  %p208_p7 = scmp.lt.s32.totalorder %s202_s19, %s202_s19 }
  0x10   :  { %p209_p8 = por %p208_p7, %p207_p6 }
  0x12   :  { %p210_p9 = pnand %p209_p8, %p203_p5 }
  0x14   :  { %213 = shalt.err (!%p210_p9)
}
  0x15   :  { %s242_s20 = smov 128   ;;  %s243_s21 = smov 8  }
  0x16   :  { %32 = dma.hbm_to_vmem [thread:$0]  %s280_s1, 256, %s27_s15, [#allocation7], %s242_s20, %s242_s20, %s243_s21  }
  0x17   :  { %234 = dma.done.wait [#allocation4], 128  }
  0x18   :  { %235 = vsyncadd [#allocation4], 4294967168 }
  0x19   :  { %236 = dma.done.wait [#allocation7], 256  }
  0x1a   :  { %237 = vsyncadd [#allocation7], 4294967040  ;;  %v244_v0 = vmov 0.0   ;;  %vm245_vm0 = vmmov 0   ;;  %v49_v1 = vld [vmem:[#allocation6 + $0x8] sm:$0xff]  ;;  %v48_v2 = vld [vmem:[#allocation6] sm:$0xff] }
  0x1b   :  { %160 = vmatprep.subr.mxu0 %v244_v0  ;;  %164 = vmatprep.mubr.msk.f32.mxu0 %vm245_vm0, %v244_v0  ;;  %v47_v3 = vld [vmem:[#allocation3] sm:$0xff]  ;;  %vm50_vm1 = vcmask 130048   ;;  %s246_s1 = smov [#allocation8]  }
  0x1c   :  { %161 = vmatpush3.msra.mxu0 %v49_v1  ;;  %v156_v4 = vld [vmem:[%s281_s2] ss:$0 sm:$0xff]  ;;  %s145_s25 = sshll.u32 %s246_s1, 4  ;;  %s146_s25 = int_to_ptr.vmem [resolvable:$true] %s145_s25 }
  0x1d   :  { %162 = vmatprep.subr.mxu0 %v244_v0  ;;  %s214_s26 = scalar_lea.vmem %s146_s25, 128  ;;  %p219_p11 = scmp.lt.s32.totalorder %s146_s25, %s146_s25 }
  0x1e   :  { %163 = vmatpush3.msra.mxu0 %v48_v2  ;;  %p215_p10 = scmp.ne.s32.totalorder %s146_s25, %s214_s26  ;;  %p220_p12 = scmp.lt.s32.totalorder %s214_s26, %s214_s26 }
  0x1f   :  { %165 = vmatmul.mubr.msk.f32.vlgmr.msra.gmra.mxu0 %vm50_vm1, %v47_v3 }
  0x20   :  { %p221_p13 = por %p220_p12, %p219_p11 }
  0x22   :  { %p222_p0 = pnand %p221_p13, %p215_p10 }
  0xdf   :  { %v120_v5 = vpop.f32.mrf.mxu0 }
  0xe0   :  { %v137_v6 = vadd.f32 %v156_v4, %v120_v5 }
  0xe1   :  { %v166_v7 = vpop.f32.mrf.mxu0 }
  0xe2   :  { %138 = vst [vmem:[#allocation8] sm:$0xff] %v137_v6 }
  0xe3   :  { %225 = shalt.err (!%p222_p0)
}
  0xe4   :  { %148 = dma.vmem_to_hbm [thread:$0]  %s146_s25, 128, %s282_s3, [#allocation5]  }
  0xe5   :  { %238 = dma.done.wait [#allocation5], 128  }
  0xe6   :  { %239 = vsyncadd [#allocation5], 4294967168 }
  0xe7   :  { %152 = vsyncpa [#allocation4], 1 }
  0xe8   :  { %153 = vsyncpa [#allocation7], 1 }
  0xe9   :  { %154 = vsyncpa [#allocation5], 1 }

</bundles_post_ra>
